<compile_context>
chip_gen: v6e
topology: v6e:2x2x1
jax: 0.10.0
libtpu: 0.0.40
codegen_flags: <defaults>
</compile_context>

<pallas_src>
import functools

import jax
import jax.numpy as jnp
import numpy as np
from jax.experimental import pallas as pl
from jax.experimental.pallas import tpu as pltpu

NUM_PART = 6
_LANE = 128
_MIB = 1024 * 1024


def _part_pool_kernel(x_ref, pm_ref, o_ref, *, inv_scale):
    """pooled = (x @ stripe01) * inv_scale, one grid step on the MXU.

    x_ref : (Bt, Ct, HW)       feature block, activation dtype (NCHW, spatial flattened)
    pm_ref: (HW, NUM_PART)     0/1 stripe matrix in the activation dtype
    o_ref : (Bt, Ct, NUM_PART) pooled output block
    """
    bt, ct, hw = x_ref.shape
    # Leading-dim fold; layout-preserving since ct is a multiple of 8 (or == C).
    x = x_ref[...].reshape(bt * ct, hw)
    acc = jnp.dot(x, pm_ref[...], preferred_element_type=jnp.float32)
    acc = acc * jnp.float32(inv_scale)  # average scale applied on the tiny f32 accumulator
    o_ref[...] = acc.reshape(bt, ct, NUM_PART).astype(o_ref.dtype)


def _divisors(n):
    out = set()
    i = 1
    while i * i <= n:
        if n % i == 0:
            out.add(i)
            out.add(n // i)
        i += 1
    return sorted(out)


def _vmem_limit_bytes():
    """Explicit scoped-VMEM limit derived from the chip's physical VMEM."""
    try:
        cap = pltpu.get_tpu_info().vmem_capacity_bytes
    except Exception:
        cap = 64 * _MIB  # conservative (v7x-sized) fallback
    # ~70% of physical, capped at 64 MiB: ~45 MiB on v7x (64 MiB physical),
    # 64 MiB on v5e/v6e (128 MiB physical).
    return int(min(cap * 0.70, 64 * _MIB))


def _choose_tiles(B, C, HW, itemsize, budget_bytes):
    """Pick (b_tile, c_tile): biggest padding-aware blocks under budget, >= 2 grid steps."""
    hw_pad = -(-HW // _LANE) * _LANE       # input block lane padding
    out_pad = _LANE                        # NUM_PART=6 lane-pads to one 128-lane tile
    c_floor = max(8, 32 // itemsize)       # sublane packing: 8 (f32) / 16 (bf16) / 32 (int8)

    def step_bytes(bt, ct):
        in_blk = bt * ct * hw_pad * itemsize
        out_blk = bt * max(ct, 8) * out_pad * itemsize   # lane-padded output block
        return 2 * (in_blk + out_blk)                    # both double-buffered by the pipeline

    if C % c_floor == 0:
        c_cands = [d for d in _divisors(C) if d % c_floor == 0]
    else:
        # (8,128) rule: a tiled dim must be a multiple of 8 or the full extent.
        c_cands = [C]
    b_cands = _divisors(B)

    best = None  # (key, b_tile, c_tile); key = (has >=2 grid steps, block elements)
    for ct in sorted(c_cands, reverse=True):
        for bt in sorted(b_cands, reverse=True):
            if step_bytes(bt, ct) > budget_bytes:
                continue
            key = ((B // bt) * (C // ct) >= 2, bt * ct)
            if best is None or key > best[0]:
                best = (key, bt, ct)
    if best is None:
        # Nothing fits (awkward C with C % 8 != 0): smallest legal block, rely on vmem limit.
        return 1, min(c_cands)
    return best[1], best[2]


def part_avg_pool(x_nchw):
    """Equivalent of:
         sx = H // 6; kx = H - sx * 5
         F.avg_pool2d(x, kernel_size=(kx, W), stride=(sx, W)).view(B, C, 6)
    """
    B, C, H, W = x_nchw.shape
    sx = H // NUM_PART
    kx = H - sx * (NUM_PART - 1)
    assert sx >= 1, "H must be >= num_part"
    HW = H * W

    # 0/1 stripe matrix in the activation dtype (exact); avg scale stays in f32 post-dot.
    pm = np.zeros((HW, NUM_PART), dtype=np.float32)
    for p in range(NUM_PART):
        pm[p * sx * W:(p * sx + kx) * W, p] = 1.0
    pool_mat = jnp.asarray(pm, dtype=x_nchw.dtype)
    inv_scale = 1.0 / float(kx * W)

    # Free reshape: NCHW stays put, spatial axis flattened onto lanes.
    x_flat = x_nchw.reshape(B, C, HW)
    itemsize = jnp.dtype(x_nchw.dtype).itemsize

    vmem_limit = _vmem_limit_bytes()
    # Leave headroom under the scoped limit for pm, semaphores and compiler scratch.
    b_tile, c_tile = _choose_tiles(B, C, HW, itemsize, int(vmem_limit * 0.75))

    cost = pl.CostEstimate(
        flops=2 * B * C * HW * NUM_PART,
        transcendentals=0,
        bytes_accessed=B * C * HW * itemsize
        + HW * NUM_PART * itemsize
        + B * C * NUM_PART * itemsize,
    )

    pooled = pl.pallas_call(
        functools.partial(_part_pool_kernel, inv_scale=inv_scale),
        out_shape=jax.ShapeDtypeStruct((B, C, NUM_PART), x_nchw.dtype),
        grid_spec=pl.GridSpec(
            grid=(B // b_tile, C // c_tile),
            in_specs=[
                pl.BlockSpec((b_tile, c_tile, HW), lambda b, c: (b, c, 0)),
                pl.BlockSpec((HW, NUM_PART), lambda b, c: (0, 0)),
            ],
            out_specs=pl.BlockSpec((b_tile, c_tile, NUM_PART), lambda b, c: (b, c, 0)),
        ),
        compiler_params=pltpu.CompilerParams(
            dimension_semantics=("parallel", "parallel"),
            vmem_limit_bytes=vmem_limit,
        ),
        cost_estimate=cost,
    )(x_flat, pool_mat)
    return pooled  # (B, C, NUM_PART), no wrapper transpose needed


def visible_net_resnet_forward(x):
    """Forward pass of visible_net_resnet.

    x: (B, C, H, W) feature-map-shaped input (NCHW, matching torch).
    Returns (pooled, ori_x): pooled (B, C, 6), ori_x (B, C, H, W).
    """
    # TODO(synk): RGA_Branch (ResNet50 + RGA attention) is not defined in the provided
    # source; the backbone is treated as identity and `x` plays the role of its output.
    feat = x
    ori_x = feat  # x.clone() is a no-op under JAX immutability
    pooled = part_avg_pool(feat)
    return pooled, ori_x


def _reference(x):
    B, C, H, W = x.shape
    sx = H // NUM_PART
    kx = H - sx * (NUM_PART - 1)
    cols = [
        jnp.mean(x[:, :, p * sx:p * sx + kx, :], axis=(2, 3)) for p in range(NUM_PART)
    ]
    return jnp.stack(cols, axis=-1)  # (B, C, 6)


if __name__ == "__main__":
    key = jax.random.PRNGKey(0)
    # Small-scale stand-in for the real (B, 2048, 16, 8) ResNet50 feature map.
    B, C, H, W = 2, 64, 16, 8
    x = jax.random.normal(key, (B, C, H, W), dtype=jnp.float32)

    pooled, ori_x = visible_net_resnet_forward(x)
    pooled = jax.block_until_ready(pooled)
    ori_x = jax.block_until_ready(ori_x)

    assert pooled.shape == (B, C, NUM_PART)
    assert ori_x.shape == (B, C, H, W)

    ref = _reference(x)
    np.testing.assert_allclose(np.asarray(pooled), np.asarray(ref), rtol=1e-5, atol=1e-5)
    np.testing.assert_allclose(np.asarray(ori_x), np.asarray(x), rtol=0, atol=0)

    print("KERNEL_OK")
</pallas_src>

<mosaic_0001>
module attributes {stable_mosaic.version = 11 : i64} {
  func.func @_part_pool_kernel(%arg0: i32, %arg1: i32, %arg2: memref<1x64x128xf32, #tpu.memory_space<vmem>>, %arg3: memref<128x6xf32, #tpu.memory_space<vmem>>, %arg4: memref<1x64x6xf32, #tpu.memory_space<vmem>>) attributes {dimension_semantics = [#tpu.dimension_semantics<parallel>, #tpu.dimension_semantics<parallel>], iteration_bounds = array<i64: 2, 1>, scalar_prefetch = 0 : i64, scratch_operands = 0 : i64, tpu.core_type = #tpu.core_type<tc>, window_params = [{transform_indices = @transform_0, window_bounds = array<i64: 1, 64, 128>}, {pipeline_mode = #tpu.pipeline_mode<synchronous>, transform_indices = @transform_1, window_bounds = array<i64: 128, 6>}, {transform_indices = @transform_2, window_bounds = array<i64: 1, 64, 6>}]} {
    %c0 = arith.constant 0 : index
    %c0_0 = arith.constant 0 : index
    %c0_1 = arith.constant 0 : index
    %0 = vector.load %arg2[%c0, %c0_0, %c0_1] : memref<1x64x128xf32, #tpu.memory_space<vmem>>, vector<1x64x128xf32>
    %1 = vector.shape_cast %0 : vector<1x64x128xf32> to vector<64x128xf32>
    %c0_2 = arith.constant 0 : index
    %c0_3 = arith.constant 0 : index
    %2 = vector.load %arg3[%c0_2, %c0_3] : memref<128x6xf32, #tpu.memory_space<vmem>>, vector<128x6xf32>
    %cst = arith.constant dense<0.000000e+00> : vector<64x6xf32>
    %3 = tpu.matmul %1, %2, %cst {dimension_numbers = #tpu.dot_dimension_numbers<[1], [0], [0], [1], [0, 0, 1, 1], [], []>} : vector<64x128xf32>, vector<128x6xf32>, vector<64x6xf32> -> vector<64x6xf32>
    %cst_4 = arith.constant 0.020833334 : f32
    %4 = vector.broadcast %cst_4 : f32 to vector<64x6xf32>
    %5 = arith.mulf %3, %4 : vector<64x6xf32>
    %6 = vector.shape_cast %5 : vector<64x6xf32> to vector<1x64x6xf32>
    %c0_5 = arith.constant 0 : index
    %c0_6 = arith.constant 0 : index
    %c0_7 = arith.constant 0 : index
    %7 = vector.load %arg4[%c0_5, %c0_6, %c0_7] : memref<1x64x6xf32, #tpu.memory_space<vmem>>, vector<1x64x6xf32>
    tpu.vector_store %arg4[%c0_5, %c0_6, %c0_7], %6 {strides = array<i32>} : memref<1x64x6xf32, #tpu.memory_space<vmem>>, vector<1x64x6xf32>,
    return
  }
  func.func @transform_0(%arg0: i32, %arg1: i32) -> (i32, i32, i32) {
    %c0_i32 = arith.constant 0 : i32
    %c0_i32_0 = arith.constant 0 : i32
    return %arg0, %arg1, %c0_i32 : i32, i32, i32
  }
  func.func @transform_1(%arg0: i32, %arg1: i32) -> (i32, i32) {
    %c0_i32 = arith.constant 0 : i32
    %c0_i32_0 = arith.constant 0 : i32
    %c0_i32_1 = arith.constant 0 : i32
    return %c0_i32, %c0_i32_0 : i32, i32
  }
  func.func @transform_2(%arg0: i32, %arg1: i32) -> (i32, i32, i32) {
    %c0_i32 = arith.constant 0 : i32
    %c0_i32_0 = arith.constant 0 : i32
    return %arg0, %arg1, %c0_i32 : i32, i32, i32
  }
}

</mosaic_0001>

<bundles_post_ra>
// kernel: tpu_custom_call.1
= control target key start
LH: loop header
LB: loop body
LE: loop exit
PB: predicated region body
PF: predicated region fallthrough
CT: control target
= control target key end

     0   :  { %s592_s9 = smov 0   ;;  %s594_s10 = smov 0   ;;  %s692_s0 = inlined_call_operand.vmem [shape: f32[2,64,128], index: 0, kind: input, shape index: {}]   ;;  %s693_s1 = inlined_call_operand.vmem [shape: f32[128,6], index: 1, kind: input, shape index: {}]   ;;  %s694_s2 = inlined_call_operand.vmem [shape: f32[2,64,6], index: 2, kind: output, shape index: {}]  }
   0x1   :  { %s596_s11 = smov 0  }
   0x2 LB: > { %s24_s12 = sadd.s32 1, %s571_s10  ;;  %p420_p0 = scmp.ge.s32.totalorder %s575_s11, 1  ;;  %s575_s11 = sphi %s596_s11, %s12_s11   ;;  %s571_s10 = sphi %s594_s10, %s696_s10   ;;  %s567_s9 = sphi %s592_s9, %s695_s9  }
   0x3   : > { %p26_p1 = scmp.ge.s32.totalorder %s24_s12, 2  ;;  %p133_p2 = scmp.lt.s32.totalorder %s575_s11, 3 }
   0x5   : > { %s698_s12 = smov (%p26_p1, %s24_s12), 0  ;;  %p134_p3 = pnand %p420_p0, %p133_p2 }
   0x6   : > { %p164_p4 = scmp.lt.s32.totalorder (!%p134_p3), %s567_s9, 1 }
   0x7   : > { %137 = sbr.rel (%p134_p3) target bundleno = 248 (0xf8), region = 28 }
   0xc   : > { %v206_v0 = vld [vmem:[%s693_s1 + $0x78] sm:$0xff]  ;;  %v205_v1 = vld [vmem:[%s693_s1 + $0x70] sm:$0xff]  ;;  %v204_v2 = vld [vmem:[%s693_s1 + $0x68] sm:$0xff]  ;;  %s700_s9 = smov (!%p164_p4, %s567_s9), 1  ;;  %vm320_vm0 = vcmask 48128  }
   0xd   : > { %453 = vmatprep.subr.mxu0 %v206_v0  ;;  %497 = vmatprep.subr.mxu1 %v206_v0  ;;  %v203_v3 = vld [vmem:[%s693_s1 + $0x60] sm:$0xff]  ;;  %v202_v4 = vld [vmem:[%s693_s1 + $0x58] sm:$0xff]  ;;  %v201_v5 = vld [vmem:[%s693_s1 + $0x50] sm:$0xff]  ;;  %s427_s17 = sshll.u32 %s700_s9, 6 }
   0xe   : > { %454 = vmatpush3.msra.mxu0 %v206_v0  ;;  %513 = vmatpush3.msra.mxu1 %v206_v0  ;;  %v200_v6 = vld [vmem:[%s693_s1 + $0x48] sm:$0xff]  ;;  %v199_v7 = vld [vmem:[%s693_s1 + $0x40] sm:$0xff]  ;;  %v198_v8 = vld [vmem:[%s693_s1 + $0x38] sm:$0xff]  ;;  %s171_s22 = scalar_lea.vmem %s692_s0, %s427_s17  ;;  %s181_s27 = scalar_lea.vmem %s694_s2, %s427_s17 }
   0xf   : > { %455 = vmatprep.subr.mxu0 %v205_v1  ;;  %498 = vmatprep.subr.mxu1 %v205_v1  ;;  %v197_v9 = vld [vmem:[%s693_s1 + $0x30] sm:$0xff]  ;;  %v196_v10 = vld [vmem:[%s693_s1 + $0x28] sm:$0xff]  ;;  %v195_v11 = vld [vmem:[%s693_s1 + $0x20] sm:$0xff] }
  0x10   : > { %456 = vmatpush3.msra.mxu0 %v205_v1  ;;  %514 = vmatpush3.msra.mxu1 %v205_v1  ;;  %v194_v12 = vld [vmem:[%s693_s1 + $0x18] sm:$0xff]  ;;  %v193_v13 = vld [vmem:[%s693_s1 + $0x10] sm:$0xff]  ;;  %v192_v14 = vld [vmem:[%s693_s1 + $0x8] sm:$0xff] }
  0x11   : > { %457 = vmatprep.subr.mxu0 %v204_v2  ;;  %499 = vmatprep.subr.mxu1 %v204_v2  ;;  %v191_v15 = vld [vmem:[%s693_s1] sm:$0xff]  ;;  %v184_v18 = vld [vmem:[%s171_s22 + $0x8] sm:$0xff]  ;;  %v185_v20 = vld [vmem:[%s171_s22 + $0x10] sm:$0xff] }
  0x12   : > { %458 = vmatpush3.msra.mxu0 %v204_v2  ;;  %515 = vmatpush3.msra.mxu1 %v204_v2  ;;  %v183_v16 = vld [vmem:[%s171_s22] sm:$0xff]  ;;  %v188_v19 = vld [vmem:[%s171_s22 + $0x28] sm:$0xff]  ;;  %v189_v21 = vld [vmem:[%s171_s22 + $0x30] sm:$0xff] }
  0x13   : > { %459 = vmatprep.subr.mxu0 %v203_v3  ;;  %500 = vmatprep.subr.mxu1 %v203_v3  ;;  %v187_v17 = vld [vmem:[%s171_s22 + $0x20] sm:$0xff]  ;;  %v186_v22 = vld [vmem:[%s171_s22 + $0x18] sm:$0xff] }
  0x14   : > { %460 = vmatpush3.msra.mxu0 %v203_v3  ;;  %516 = vmatpush3.msra.mxu1 %v203_v3  ;;  %v190_v23 = vld [vmem:[%s171_s22 + $0x38] sm:$0xff] }
  0x15   : > { %461 = vmatprep.subr.mxu0 %v202_v4  ;;  %501 = vmatprep.subr.mxu1 %v202_v4 }
  0x16   : > { %462 = vmatpush3.msra.mxu0 %v202_v4  ;;  %517 = vmatpush3.msra.mxu1 %v202_v4 }
  0x17   : > { %463 = vmatprep.subr.mxu0 %v201_v5  ;;  %502 = vmatprep.subr.mxu1 %v201_v5 }
  0x18   : > { %464 = vmatpush3.msra.mxu0 %v201_v5  ;;  %518 = vmatpush3.msra.mxu1 %v201_v5 }
  0x19   : > { %465 = vmatprep.subr.mxu0 %v200_v6  ;;  %503 = vmatprep.subr.mxu1 %v200_v6 }
  0x1a   : > { %466 = vmatpush3.msra.mxu0 %v200_v6  ;;  %519 = vmatpush3.msra.mxu1 %v200_v6 }
  0x1b   : > { %467 = vmatprep.subr.mxu0 %v199_v7  ;;  %504 = vmatprep.subr.mxu1 %v199_v7 }
  0x1c   : > { %468 = vmatpush3.msra.mxu0 %v199_v7  ;;  %520 = vmatpush3.msra.mxu1 %v199_v7 }
  0x1d   : > { %469 = vmatprep.subr.mxu0 %v198_v8  ;;  %505 = vmatprep.subr.mxu1 %v198_v8 }
  0x1e   : > { %470 = vmatpush3.msra.mxu0 %v198_v8  ;;  %521 = vmatpush3.msra.mxu1 %v198_v8 }
  0x1f   : > { %471 = vmatprep.subr.mxu0 %v197_v9  ;;  %506 = vmatprep.subr.mxu1 %v197_v9 }
  0x20   : > { %472 = vmatpush3.msra.mxu0 %v197_v9  ;;  %522 = vmatpush3.msra.mxu1 %v197_v9 }
  0x21   : > { %473 = vmatprep.subr.mxu0 %v196_v10  ;;  %507 = vmatprep.subr.mxu1 %v196_v10 }
  0x22   : > { %474 = vmatpush3.msra.mxu0 %v196_v10  ;;  %523 = vmatpush3.msra.mxu1 %v196_v10 }
  0x23   : > { %475 = vmatprep.subr.mxu0 %v195_v11  ;;  %508 = vmatprep.subr.mxu1 %v195_v11 }
  0x24   : > { %476 = vmatpush3.msra.mxu0 %v195_v11  ;;  %524 = vmatpush3.msra.mxu1 %v195_v11 }
  0x25   : > { %477 = vmatprep.subr.mxu0 %v194_v12  ;;  %509 = vmatprep.subr.mxu1 %v194_v12 }
  0x26   : > { %478 = vmatpush3.msra.mxu0 %v194_v12  ;;  %525 = vmatpush3.msra.mxu1 %v194_v12 }
  0x27   : > { %479 = vmatprep.subr.mxu0 %v193_v13  ;;  %510 = vmatprep.subr.mxu1 %v193_v13 }
  0x28   : > { %480 = vmatpush3.msra.mxu0 %v193_v13  ;;  %526 = vmatpush3.msra.mxu1 %v193_v13 }
  0x29   : > { %481 = vmatprep.subr.mxu0 %v192_v14  ;;  %511 = vmatprep.subr.mxu1 %v192_v14 }
  0x2a   : > { %482 = vmatpush3.msra.mxu0 %v192_v14  ;;  %527 = vmatpush3.msra.mxu1 %v192_v14 }
  0x2b   : > { %483 = vmatprep.subr.mxu0 %v191_v15  ;;  %512 = vmatprep.subr.mxu1 %v191_v15 }
  0x2c   : > { %484 = vmatpush3.msra.mxu0 %v191_v15  ;;  %528 = vmatpush3.msra.mxu1 %v191_v15 }
  0x2d   : > { %485 = vmatprep.mubr.f32.mxu0 %v183_v16  ;;  %491 = vmatprep.mubr.f32.mxu1 %v187_v17 }
  0x2e   : > { %486 = vmatmul.mubr.f32.vlgmr.msra.gmra.mxu0 %v184_v18  ;;  %492 = vmatmul.mubr.f32.vlgmr.msra.gmra.mxu1 %v188_v19 }
  0x2f   : > { %488 = vmatprep.mubr.f32.mxu0 %v185_v20  ;;  %494 = vmatprep.mubr.f32.mxu1 %v189_v21 }
  0x32   : > { %489 = vmatmul.mubr.f32.gmra.mxu0 %v186_v22  ;;  %495 = vmatmul.mubr.f32.gmra.mxu1 %v190_v23 }
  0xee   : > { %v487_v24 = vpop.f32.mrf.mxu0  ;;  %v493_v25 = vpop.f32.mrf.mxu1 }
  0xef   : > { %v313_v26 = vmul.f32 0.020833334, %v487_v24  ;;  %v317_v27 = vmul.f32 0.020833334, %v493_v25 }
  0xf0   : > { %v273_v28 = vpop.f32.mrf.mxu0  ;;  %v293_v29 = vpop.f32.mrf.mxu1 }
  0xf1   : > { %322 = vst.msk [vmem:[%s181_s27 + $0x8] sm:$0xff] %vm320_vm0, %v313_v26  ;;  %326 = vst.msk [vmem:[%s181_s27 + $0x28] sm:$0xff] %vm320_vm0, %v317_v27  ;;  %v312_v30 = vmul.f32 0.020833334, %v273_v28  ;;  %v316_v31 = vmul.f32 0.020833334, %v293_v29 }
  0xf2   : > { %v490_v32 = vpop.f32.mrf.mxu0  ;;  %v496_v33 = vpop.f32.mrf.mxu1 }
  0xf3   : > { %321 = vst.msk [vmem:[%s181_s27] sm:$0xff] %vm320_vm0, %v312_v30  ;;  %325 = vst.msk [vmem:[%s181_s27 + $0x20] sm:$0xff] %vm320_vm0, %v316_v31  ;;  %v315_v34 = vmul.f32 0.020833334, %v490_v32  ;;  %v319_v35 = vmul.f32 0.020833334, %v496_v33 }
  0xf4   : > { %v283_v36 = vpop.f32.mrf.mxu0  ;;  %v303_v37 = vpop.f32.mrf.mxu1 }
  0xf5   : > { %324 = vst.msk [vmem:[%s181_s27 + $0x18] sm:$0xff] %vm320_vm0, %v315_v34  ;;  %328 = vst.msk [vmem:[%s181_s27 + $0x38] sm:$0xff] %vm320_vm0, %v319_v35  ;;  %v314_v38 = vmul.f32 0.020833334, %v283_v36  ;;  %v318_v39 = vmul.f32 0.020833334, %v303_v37 }
  0xf7   : > { %323 = vst.msk [vmem:[%s181_s27 + $0x10] sm:$0xff] %vm320_vm0, %v314_v38  ;;  %327 = vst.msk [vmem:[%s181_s27 + $0x30] sm:$0xff] %vm320_vm0, %v318_v39 }
  0xf8 PF: > { %s12_s11 = sadd.s32 1, %s575_s11   ;;  %s695_s9 = smov %s571_s10 }
  0xf9   : > { %p9_p5 = scmp.ge.s32.totalorder %s12_s11, 4   ;;  %s696_s10 = smov %s698_s12 }
  0xfb   :  { %11 = sbr.rel (!%p9_p5) target bundleno = 2 (0x2), region = 58 }

</bundles_post_ra>
